<compile_context>
chip_gen: v5e
topology: v5e:2x2
jax: 0.10.0
libtpu: 0.0.40
codegen_flags: <defaults>
</compile_context>

<pallas_src>
import functools

import jax
import jax.numpy as jnp
import numpy as np
from jax.experimental import pallas as pl
from jax.experimental.pallas import tpu as pltpu


def _weighted_rowsum_kernel(counts_ref, table_ref, out_ref, acc_ref):
    # counts_ref: (TV, 1)  f32 -- per-row token counts (zero on padded rows)
    # table_ref:  (TV, Dp)      -- embedding-table tile (zero-padded)
    # out_ref:    (1, 1, 1) f32 -- partial sum for this core-partition
    # acc_ref:    (TV, Dp) f32  -- lane-dense vector accumulator (VMEM scratch)
    i = pl.program_id(1)

    @pl.when(i == 0)
    def _():
        acc_ref[...] = jnp.zeros_like(acc_ref)

    # Pure VPU work each step: weight rows by their counts and accumulate.
    # No per-step cross-lane (XLU) reduction.
    acc_ref[...] += table_ref[...].astype(jnp.float32) * counts_ref[...]

    @pl.when(i == pl.num_programs(1) - 1)
    def _():
        # Single cross-lane/cross-sublane reduction, paid once per partition.
        out_ref[...] = jnp.sum(acc_ref[...]).reshape(1, 1, 1)


@functools.partial(jax.jit, static_argnames=("row_tile", "core_splits"))
def net_forward(token_ids, embed_table, *, row_tile=512, core_splits=2):
    """token_ids: [B, L] int; embed_table: [V, D] -> scalar f32 (= embed.sum())."""
    V, D = embed_table.shape
    ids = token_ids.reshape(-1).astype(jnp.int32)

    # Histogram of token ids: only T int32 reads + V f32 writes -- tiny compared
    # to streaming the table, so it stays in plain JAX (scatter-add).
    counts = jnp.zeros((V,), jnp.float32).at[ids].add(1.0)

    # --- Lane/sublane-friendly padding & tile selection -----------------------
    Dp = ((max(D, 1) + 127) // 128) * 128           # lane-dense last dim
    # VMEM budget per row: double-buffered table tile + f32 accumulator.
    bytes_per_row = Dp * (2 * jnp.dtype(embed_table.dtype).itemsize + 4)
    max_rows = max(8, (((24 * 1024 * 1024) // bytes_per_row) // 8) * 8)
    TV = min(row_tile, max_rows, ((V + 7) // 8) * 8)  # rows per tile (mult of 8)

    num_tiles = -(-V // TV)
    NC = core_splits if num_tiles >= core_splits else 1   # TC split (v7x: 2)
    num_tiles = -(-num_tiles // NC) * NC
    inner = num_tiles // NC                                # tiles per partition
    Vp = num_tiles * TV

    # Zero padding contributes nothing to the weighted sum.
    table_p = jnp.zeros((Vp, Dp), embed_table.dtype).at[:V, :D].set(embed_table)
    counts_p = jnp.zeros((Vp, 1), jnp.float32).at[:V, 0].set(counts)

    grid = (NC, inner)
    out = pl.pallas_call(
        _weighted_rowsum_kernel,
        out_shape=jax.ShapeDtypeStruct((NC, 1, 1), jnp.float32),
        grid_spec=pltpu.PrefetchScalarGridSpec(
            num_scalar_prefetch=0,
            grid=grid,
            in_specs=[
                pl.BlockSpec((TV, 1), lambda c, i: (c * inner + i, 0)),
                pl.BlockSpec((TV, Dp), lambda c, i: (c * inner + i, 0)),
            ],
            out_specs=pl.BlockSpec((1, 1, 1), lambda c, i: (c, 0, 0)),
            scratch_shapes=[pltpu.VMEM((TV, Dp), jnp.float32)],
        ),
        compiler_params=pltpu.CompilerParams(
            dimension_semantics=("parallel", "arbitrary"),
            vmem_limit_bytes=48 * 1024 * 1024,  # fits v7x 64 MiB ceiling
        ),
        cost_estimate=pl.CostEstimate(
            flops=2 * Vp * Dp,
            transcendentals=0,
            bytes_accessed=Vp * Dp * jnp.dtype(embed_table.dtype).itemsize
            + Vp * 4
            + NC * 4,
        ),
    )(counts_p, table_p)

    return jnp.sum(out)


if __name__ == "__main__":
    # Small, deterministic example consistent with the module:
    # a padded batch of token-id sequences + an embedding table.
    B, L, V, D = 2, 8, 64, 32

    key = jax.random.PRNGKey(0)
    k_ids, k_emb = jax.random.split(key)

    token_ids = jax.random.randint(k_ids, (B, L), minval=0, maxval=V, dtype=jnp.int32)
    embed_table = jax.random.normal(k_emb, (V, D), dtype=jnp.float32)

    result = net_forward(token_ids, embed_table)
    result = jax.block_until_ready(result)

    # Pure-JAX reference: embedding lookup then full sum.
    ref = jnp.sum(embed_table[token_ids])
    np.testing.assert_allclose(
        np.asarray(result), np.asarray(ref), rtol=1e-5, atol=1e-4
    )

    print("KERNEL_OK")
</pallas_src>

<mosaic_0001>
module attributes {stable_mosaic.version = 11 : i64} {
  func.func @_weighted_rowsum_kernel(%arg0: i32, %arg1: i32, %arg2: memref<64x1xf32, #tpu.memory_space<vmem>>, %arg3: memref<64x128xf32, #tpu.memory_space<vmem>>, %arg4: memref<1x1x1xf32, #tpu.memory_space<vmem>>, %arg5: memref<64x128xf32, #tpu.memory_space<vmem>>) attributes {dimension_semantics = [#tpu.dimension_semantics<parallel>, #tpu.dimension_semantics<arbitrary>], iteration_bounds = array<i64: 1, 1>, scalar_prefetch = 0 : i64, scratch_operands = 1 : i64, tpu.core_type = #tpu.core_type<tc>, window_params = [{transform_indices = @transform_0, window_bounds = array<i64: 64, 1>}, {transform_indices = @transform_1, window_bounds = array<i64: 64, 128>}, {transform_indices = @transform_2, window_bounds = array<i64: 1, 1, 1>}]} {
    %c0_i32 = arith.constant 0 : i32
    %0 = arith.cmpi eq, %arg1, %c0_i32 : i32
    %1 = arith.extui %0 : i1 to i32
    %c0_i32_0 = arith.constant 0 : i32
    %2 = arith.cmpi ne, %1, %c0_i32_0 : i32
    scf.if %2 {
      %cst = arith.constant 0.000000e+00 : f32
      %13 = vector.broadcast %cst : f32 to vector<64x128xf32>
      %c0_10 = arith.constant 0 : index
      %c0_11 = arith.constant 0 : index
      %14 = vector.load %arg5[%c0_10, %c0_11] : memref<64x128xf32, #tpu.memory_space<vmem>>, vector<64x128xf32>
      tpu.vector_store %arg5[%c0_10, %c0_11], %13 {strides = array<i32>} : memref<64x128xf32, #tpu.memory_space<vmem>>, vector<64x128xf32>,
    } else {
    }
    %c0 = arith.constant 0 : index
    %c0_1 = arith.constant 0 : index
    %3 = vector.load %arg5[%c0, %c0_1] : memref<64x128xf32, #tpu.memory_space<vmem>>, vector<64x128xf32>
    %c0_2 = arith.constant 0 : index
    %c0_3 = arith.constant 0 : index
    %4 = vector.load %arg3[%c0_2, %c0_3] : memref<64x128xf32, #tpu.memory_space<vmem>>, vector<64x128xf32>
    %c0_4 = arith.constant 0 : index
    %c0_5 = arith.constant 0 : index
    %5 = vector.load %arg2[%c0_4, %c0_5] : memref<64x1xf32, #tpu.memory_space<vmem>>, vector<64x1xf32>
    %6 = vector.broadcast %5 : vector<64x1xf32> to vector<64x128xf32>
    %7 = arith.mulf %4, %6 : vector<64x128xf32>
    %8 = arith.addf %3, %7 : vector<64x128xf32>
    %c0_6 = arith.constant 0 : index
    %c0_7 = arith.constant 0 : index
    %9 = vector.load %arg5[%c0_6, %c0_7] : memref<64x128xf32, #tpu.memory_space<vmem>>, vector<64x128xf32>
    tpu.vector_store %arg5[%c0_6, %c0_7], %8 {strides = array<i32>} : memref<64x128xf32, #tpu.memory_space<vmem>>, vector<64x128xf32>,
    %c0_i32_8 = arith.constant 0 : i32
    %10 = arith.cmpi eq, %arg1, %c0_i32_8 : i32
    %11 = arith.extui %10 : i1 to i32
    %c0_i32_9 = arith.constant 0 : i32
    %12 = arith.cmpi ne, %11, %c0_i32_9 : i32
    scf.if %12 {
      %c0_10 = arith.constant 0 : index
      %c0_11 = arith.constant 0 : index
      %13 = vector.load %arg5[%c0_10, %c0_11] : memref<64x128xf32, #tpu.memory_space<vmem>>, vector<64x128xf32>
      %14 = vector.shape_cast %13 : vector<64x128xf32> to vector<1x64x128xf32>
      %cst = arith.constant dense<0.000000e+00> : vector<1xf32>
      %15 = vector.multi_reduction <add>, %14, %cst [1, 2] : vector<1x64x128xf32> to vector<1xf32>
      %16 = vector.shape_cast %15 : vector<1xf32> to vector<1x1x1xf32>
      %17 = vector.extract %16[0, 0, 0] : f32 from vector<1x1x1xf32>
      %18 = vector.broadcast %17 : f32 to vector<1x1x1xf32>
      %c0_12 = arith.constant 0 : index
      %c0_13 = arith.constant 0 : index
      %c0_14 = arith.constant 0 : index
      %19 = vector.load %arg4[%c0_12, %c0_13, %c0_14] : memref<1x1x1xf32, #tpu.memory_space<vmem>>, vector<1x1x1xf32>
      tpu.vector_store %arg4[%c0_12, %c0_13, %c0_14], %18 {strides = array<i32>} : memref<1x1x1xf32, #tpu.memory_space<vmem>>, vector<1x1x1xf32>,
    } else {
    }
    return
  }
  func.func @transform_0(%arg0: i32, %arg1: i32) -> (i32, i32) {
    %c1_i32 = arith.constant 1 : i32
    %0 = arith.muli %arg0, %c1_i32 : i32
    %1 = arith.addi %0, %arg1 : i32
    %c0_i32 = arith.constant 0 : i32
    %c0_i32_0 = arith.constant 0 : i32
    return %1, %c0_i32 : i32, i32
  }
  func.func @transform_1(%arg0: i32, %arg1: i32) -> (i32, i32) {
    %c1_i32 = arith.constant 1 : i32
    %0 = arith.muli %arg0, %c1_i32 : i32
    %1 = arith.addi %0, %arg1 : i32
    %c0_i32 = arith.constant 0 : i32
    %c0_i32_0 = arith.constant 0 : i32
    return %1, %c0_i32 : i32, i32
  }
  func.func @transform_2(%arg0: i32, %arg1: i32) -> (i32, i32, i32) {
    %c0_i32 = arith.constant 0 : i32
    %c0_i32_0 = arith.constant 0 : i32
    %c0_i32_1 = arith.constant 0 : i32
    return %arg0, %c0_i32, %c0_i32_0 : i32, i32, i32
  }
}

</mosaic_0001>

<bundles_post_ra>
// kernel: net_forward.1
= control target key start
LH: loop header
LB: loop body
LE: loop exit
PB: predicated region body
PF: predicated region fallthrough
CT: control target
= control target key end

     0   :  { %v247_v2 = vmov 0   ;;  %s315_s0 = inlined_call_operand.vmem [shape: f32[64,1], index: 0, kind: input, shape index: {}]   ;;  %s316_s1 = inlined_call_operand.vmem [shape: f32[64,128], index: 1, kind: input, shape index: {}]   ;;  %s317_s2 = inlined_call_operand.hbm [shape: f32[1,1,1], index: 2, kind: output, shape index: {}]  }
   0x1   :  { %v86_v0 = vld [vmem:[%s315_s0 + $0x10] sm:$0xff]  ;;  %v84_v1 = vld [vmem:[%s315_s0] sm:$0xff]  ;;  %219 = vset.pattern.permute.xlu1 %v247_v2  ;;  %218 = vset.pattern.permute.xlu0 %v247_v2 }
   0x2   :  { %104 = vperm.xlu1 %219, %v86_v0   ;;  %94 = vperm.xlu0 %218, %v84_v1   ;;  %v88_v3 = vld [vmem:[%s315_s0 + $0x20] sm:$0xff] }
   0x3   :  { %7 = vsyncpa [#allocation4], 0  ;;  %220 = vset.pattern.permute.xlu2 %v247_v2  ;;  %v87_v4 = vld [vmem:[%s315_s0 + $0x18] sm:$0xff]  ;;  %v85_v5 = vld [vmem:[%s315_s0 + $0x8] sm:$0xff]  ;;  %s248_s12 = smov [#allocation3]   ;;  %vm184_vm0 = vcmask 0  }
   0x4   :  { %114 = vperm.xlu2 %220, %v88_v3   ;;  %v89_v6 = vld [vmem:[%s315_s0 + $0x28] sm:$0xff]  ;;  %v91_v7 = vld [vmem:[%s315_s0 + $0x38] sm:$0xff]  ;;  %v90_v8 = vld [vmem:[%s315_s0 + $0x30] sm:$0xff]  ;;  %s191_s13 = sshll.u32 %s248_s12, 4  ;;  %s192_s13 = int_to_ptr.vmem [resolvable:$true] %s191_s13 }
   0x5   :  { %v76_v12 = vld [vmem:[%s316_s1] sm:$0xff]  ;;  %v77_v13 = vld [vmem:[%s316_s1 + $0x8] sm:$0xff]  ;;  %v78_v14 = vld [vmem:[%s316_s1 + $0x10] sm:$0xff] }
   0x6   :  { %v79_v19 = vld [vmem:[%s316_s1 + $0x18] sm:$0xff]  ;;  %v80_v22 = vld [vmem:[%s316_s1 + $0x20] sm:$0xff]  ;;  %v81_v26 = vld [vmem:[%s316_s1 + $0x28] sm:$0xff] }
   0x7   :  { %v82_v30 = vld [vmem:[%s316_s1 + $0x30] sm:$0xff]  ;;  %v83_v34 = vld [vmem:[%s316_s1 + $0x38] sm:$0xff]  ;;  %s193_s1 = sshll.u32 %s317_s2, 4  ;;  %s194_s1 = int_to_ptr.hbm [resolvable:$true] %s193_s1 }
   0xa   :  { %109 = vperm.xlu1 %219, %v87_v4   ;;  %99 = vperm.xlu0 %218, %v85_v5  }
   0xc   :  { %119 = vperm.xlu2 %220, %v89_v6  }
  0x12   :  { %129 = vperm.xlu1 %219, %v91_v7   ;;  %124 = vperm.xlu0 %218, %v90_v8  }
  0x5e   :  { %v115_v11 = vpop.permute.xlu2 %114 }
  0x5f   :  { %v136_v27 = vmul.f32 %v115_v11, %v80_v22 }
  0x66   :  { %v120_v25 = vpop.permute.xlu2 %119 }
  0x67   :  { %v137_v31 = vmul.f32 %v120_v25, %v81_v26 }
  0x74   :  { %v105_v9 = vpop.permute.xlu1 %104  ;;  %v95_v10 = vpop.permute.xlu0 %94 }
  0x75   :  { %v132_v17 = vmul.f32 %v95_v10, %v76_v12  ;;  %v134_v20 = vmul.f32 %v105_v9, %v78_v14 }
  0x7c   :  { %v110_v15 = vpop.permute.xlu1 %109  ;;  %v100_v16 = vpop.permute.xlu0 %99 }
  0x7d   :  { %v133_v18 = vmul.f32 %v100_v16, %v77_v13  ;;  %v135_v23 = vmul.f32 %v110_v15, %v79_v19 }
  0x7f   :  { %v167_v21 = vadd.f32 %v133_v18, %v132_v17 }
  0x81   :  { %v168_v24 = vadd.f32 %v167_v21, %v134_v20 }
  0x83   :  { %v169_v28 = vadd.f32 %v168_v24, %v135_v23 }
  0x84   :  { %v125_v29 = vpop.permute.xlu0 %124  ;;  %v130_v33 = vpop.permute.xlu1 %129 }
  0x85   :  { %v170_v32 = vadd.f32 %v169_v28, %v136_v27  ;;  %v138_v35 = vmul.f32 %v125_v29, %v82_v30  ;;  %v139_v37 = vmul.f32 %v130_v33, %v83_v34 }
  0x87   :  { %v171_v36 = vadd.f32 %v170_v32, %v137_v31 }
  0x89   :  { %v172_v38 = vadd.f32 %v171_v36, %v138_v35 }
  0x8b   :  { %v173_v39 = vadd.f32 %v172_v38, %v139_v37 }
  0x8d   :  { %174 = vadd.xlane.f32.xlu2 %v173_v39 }
 0x100   :  { %v175_v40 = vpop.xlane.xlu2 %174 }
 0x101   :  { %v176_v41 = vrot.slane %v175_v40, 4 }
 0x103   :  { %v177_v42 = vadd.f32 %v176_v41, %v175_v40 }
 0x105   :  { %v178_v43 = vrot.slane %v177_v42, 2 }
 0x107   :  { %v179_v44 = vadd.f32 %v178_v43, %v177_v42 }
 0x109   :  { %v180_v45 = vrot.slane %v179_v44, 1 }
 0x10b   :  { %v181_v46 = vadd.f32 %v180_v45, %v179_v44 }
 0x10d   :  { %214 = vpush %v181_v46 }
 0x13e   :  { %s215_s16 = spop %214 }
 0x13f   :  { %v183_v47 = vstv %s215_s16 }
 0x140   :  { %185 = vst.msk [vmem:[#allocation3] sm:$0x1] %vm184_vm0, %v183_v47 }
 0x141   :  { %196 = dma.vmem_to_hbm [thread:$0]  %s192_s13, 16, %s194_s1, [#allocation4]  }
 0x142   :  { %245 = dma.done.wait [#allocation4], 16  }
 0x143   :  { %246 = vsyncadd [#allocation4], 4294967280 }
 0x144   :  { %201 = vsyncpa [#allocation4], 1 }

</bundles_post_ra>
